<compile_context>
chip_gen: v5e
topology: v5e:2x2
jax: 0.10.0
libtpu: 0.0.40
codegen_flags: <defaults>
</compile_context>

<pallas_src>
import functools

import jax
import jax.numpy as jnp
from jax.experimental import pallas as pl
from jax.experimental.pallas import tpu as pltpu

LANE = 128          # last dims must be multiples of 128 for dense (unmasked) vst
SUBLANE_BF16 = 16   # bf16 packs 16 sublanes per vreg


def _round_up(n, m):
    return ((n + m - 1) // m) * m


def _mlp_kernel(*refs, n_layers, pdims):
    """Fused MLP over one batch tile.

    refs layout: [x, w0, b0, w1, b1, ..., w_{L-1}, b_{L-1}, out, h0, h1]
    pdims: padded layer widths (d0, ..., dL); pdims[i] is layer i's input width.
    Weights/activations are bf16 (MXU native rate), accumulation + epilogue f32.
    Intermediate activations ping-pong between the two bf16 VMEM scratch bufs.
    """
    x_ref = refs[0]
    out_ref = refs[1 + 2 * n_layers]
    h = refs[2 + 2 * n_layers:]          # two bf16 VMEM scratch buffers

    for i in range(n_layers):            # static unroll over layers
        w_ref = refs[1 + 2 * i]
        b_ref = refs[2 + 2 * i]
        d_in = pdims[i]
        d_out = pdims[i + 1]

        if i == 0:
            a = x_ref[...]                        # bf16 input tile
        else:
            a = h[(i - 1) % 2][:, :d_in]          # bf16 activation (lane-dense slice)

        # MXU matmul, bf16 operands, f32 accumulation; f32 epilogue.
        acc = jnp.dot(a, w_ref[...], preferred_element_type=jnp.float32)
        acc = acc + b_ref[...]

        if i < n_layers - 1:
            acc = jnp.maximum(acc, 0.0)
            h[i % 2][:, :d_out] = acc.astype(h[i % 2].dtype)   # stay resident in VMEM
        else:
            out_ref[...] = acc.astype(out_ref.dtype)


def init_mlp_params(key, n_inputs, n_hidden, n_classes, dtype=jnp.float32):
    """Init mirroring nn.Linear, weights stored PRE-TRANSPOSED as (D_in, D_out)."""
    sizes = [n_inputs] + list(n_hidden) + [n_classes]
    params = []
    for i in range(len(sizes) - 1):
        fan_in, fan_out = sizes[i], sizes[i + 1]
        key, kw, kb = jax.random.split(key, 3)
        bound = 1.0 / (fan_in ** 0.5)
        w = jax.random.uniform(kw, (fan_in, fan_out), dtype, minval=-bound, maxval=bound)
        b = jax.random.uniform(kb, (fan_out,), dtype, minval=-bound, maxval=bound)
        params.append((w, b))
    return params


def prepare_params(params):
    """One-time: pad every feature dim to x128 and cast weights to bf16.

    Biases stay f32 (f32 epilogue). Returns (padded_params, dims, pdims) with
    dims/pdims as tuples (jit-static).
    """
    dims = tuple([params[0][0].shape[0]] + [w.shape[1] for w, _ in params])
    pdims = tuple(_round_up(d, LANE) for d in dims)
    padded = []
    for i, (w, b) in enumerate(params):
        wp = jnp.zeros((pdims[i], pdims[i + 1]), jnp.bfloat16)
        wp = wp.at[: w.shape[0], : w.shape[1]].set(w.astype(jnp.bfloat16))
        bp = jnp.zeros((1, pdims[i + 1]), jnp.float32)
        bp = bp.at[0, : b.shape[0]].set(b.astype(jnp.float32))
        padded.append((wp, bp))
    return padded, dims, pdims


def _const_spec(shape):
    """Spec for blocks whose index never changes across the grid: single-buffer
    them so the pipeline does not keep two resident copies of every weight."""
    try:
        return pl.BlockSpec(shape, lambda i: (0, 0), pipeline_mode=pl.Buffered(1))
    except (TypeError, AttributeError):
        # Older JAX without pipeline_mode: fall back to default double buffering.
        return pl.BlockSpec(shape, lambda i: (0, 0))


@functools.partial(jax.jit, static_argnames=("dims", "pdims", "block_rows"))
def mlp_forward_fused(x, padded_params, *, dims, pdims, block_rows=256):
    B, d_in = x.shape
    n_layers = len(padded_params)

    # Row tile: whole (16-aligned, bf16 sublane packing) batch for tiny batches,
    # block_rows-row tiles otherwise.
    tm = min(block_rows, _round_up(B, SUBLANE_BF16))
    B_pad = _round_up(B, tm)
    x_pad = jnp.zeros((B_pad, pdims[0]), jnp.bfloat16)
    x_pad = x_pad.at[:B, :d_in].set(x.astype(jnp.bfloat16))

    # Asymmetric ping-pong scratch: buffer 0 holds even-indexed hidden-layer
    # outputs, buffer 1 odd-indexed ones.
    even_w = [pdims[i + 1] for i in range(n_layers - 1) if i % 2 == 0]
    odd_w = [pdims[i + 1] for i in range(n_layers - 1) if i % 2 == 1]
    buf_w = (max(even_w, default=LANE), max(odd_w, default=LANE))

    flat_inputs = [x_pad]
    in_specs = [pl.BlockSpec((tm, pdims[0]), lambda i: (i, 0))]
    for li, (w, b) in enumerate(padded_params):
        flat_inputs += [w, b]
        in_specs += [_const_spec((pdims[li], pdims[li + 1])),
                     _const_spec((1, pdims[li + 1]))]

    n_steps = B_pad // tm
    flops = sum(2 * B_pad * pdims[i] * pdims[i + 1] for i in range(n_layers))
    bytes_accessed = (
        x_pad.size * x_pad.dtype.itemsize
        + sum(w.size * w.dtype.itemsize + b.size * b.dtype.itemsize
              for w, b in padded_params)
        + B_pad * pdims[-1] * 4)

    # VMEM budget: pipelined x/out blocks (2 buffers each), single-buffered bf16
    # weights + f32 biases, bf16 activation scratch.  Raise the scoped-VMEM limit
    # past the 16/32 MiB defaults, capped at 64 MiB (v7x per-TC physical).
    vmem_need = (2 * tm * pdims[0] * 2
                 + 2 * tm * pdims[-1] * 4
                 + sum(w.size * 2 + b.size * 4 for w, b in padded_params)
                 + tm * (buf_w[0] + buf_w[1]) * 2)
    vmem_limit = int(min(max(2 * vmem_need, 32 << 20), 64 << 20))

    # Megacore-shard the batch axis only when there is enough work per core;
    # with 1-2 grid steps the kernel is weight-DMA bound and sharding would
    # double weight HBM traffic (each TC DMAs the full weight set).
    semantics = ("parallel",) if n_steps > 2 else ("arbitrary",)

    kernel = functools.partial(_mlp_kernel, n_layers=n_layers, pdims=pdims)
    out_pad = pl.pallas_call(
        kernel,
        out_shape=jax.ShapeDtypeStruct((B_pad, pdims[-1]), jnp.float32),
        grid=(n_steps,),
        in_specs=in_specs,
        out_specs=pl.BlockSpec((tm, pdims[-1]), lambda i: (i, 0)),
        scratch_shapes=[
            pltpu.VMEM((tm, buf_w[0]), jnp.bfloat16),
            pltpu.VMEM((tm, buf_w[1]), jnp.bfloat16),
        ],
        compiler_params=pltpu.CompilerParams(
            dimension_semantics=semantics,
            vmem_limit_bytes=vmem_limit,
        ),
        cost_estimate=pl.CostEstimate(
            flops=flops, transcendentals=0, bytes_accessed=bytes_accessed),
    )(*flat_inputs)

    return out_pad[:B, : dims[-1]]


if __name__ == "__main__":
    key = jax.random.PRNGKey(0)
    batch = 8
    n_inputs = 32
    n_hidden = [64, 48]
    n_classes = 16

    key, kx, kp = jax.random.split(key, 3)
    x = jax.random.normal(kx, (batch, n_inputs), jnp.float32)
    params = init_mlp_params(kp, n_inputs, n_hidden, n_classes)
    padded_params, dims, pdims = prepare_params(params)

    out = mlp_forward_fused(x, padded_params, dims=dims, pdims=pdims)
    out = jax.block_until_ready(out)

    # Reference A: exact emulation of the kernel numerics
    # (bf16 operands, f32 accumulation, f32 epilogue, bf16 inter-layer cast).
    a = x.astype(jnp.bfloat16)
    ref_bf16 = None
    for i, (w, b) in enumerate(params):
        acc = jnp.dot(a, w.astype(jnp.bfloat16),
                      preferred_element_type=jnp.float32) + b.astype(jnp.float32)
        if i != len(params) - 1:
            a = jnp.maximum(acc, 0.0).astype(jnp.bfloat16)
        else:
            ref_bf16 = acc

    # Reference B: plain f32 math (loose tolerance covers bf16 operand rounding).
    ref_f32 = x
    for i, (w, b) in enumerate(params):
        ref_f32 = ref_f32 @ w + b
        if i != len(params) - 1:
            ref_f32 = jnp.maximum(ref_f32, 0.0)

    assert out.shape == (batch, n_classes)
    assert jnp.allclose(out, ref_bf16, atol=1e-3, rtol=1e-3), \
        float(jnp.max(jnp.abs(out - ref_bf16)))
    assert jnp.allclose(out, ref_f32, atol=5e-2, rtol=5e-2), \
        float(jnp.max(jnp.abs(out - ref_f32)))
    print("KERNEL_OK")
</pallas_src>

<mosaic_0001>
module attributes {stable_mosaic.version = 11 : i64} {
  func.func @_mlp_kernel(%arg0: i32, %arg1: memref<16x128xbf16, #tpu.memory_space<vmem>>, %arg2: memref<128x128xbf16, #tpu.memory_space<vmem>>, %arg3: memref<1x128xf32, #tpu.memory_space<vmem>>, %arg4: memref<128x128xbf16, #tpu.memory_space<vmem>>, %arg5: memref<1x128xf32, #tpu.memory_space<vmem>>, %arg6: memref<128x128xbf16, #tpu.memory_space<vmem>>, %arg7: memref<1x128xf32, #tpu.memory_space<vmem>>, %arg8: memref<16x128xf32, #tpu.memory_space<vmem>>, %arg9: memref<16x128xbf16, #tpu.memory_space<vmem>>, %arg10: memref<16x128xbf16, #tpu.memory_space<vmem>>) attributes {dimension_semantics = [#tpu.dimension_semantics<arbitrary>], iteration_bounds = array<i64: 1>, scalar_prefetch = 0 : i64, scratch_operands = 2 : i64, tpu.core_type = #tpu.core_type<tc>, window_params = [{transform_indices = @transform_0, window_bounds = array<i64: 16, 128>}, {pipeline_mode = #tpu.pipeline_mode<synchronous>, transform_indices = @transform_1, window_bounds = array<i64: 128, 128>}, {pipeline_mode = #tpu.pipeline_mode<synchronous>, transform_indices = @transform_2, window_bounds = array<i64: 1, 128>}, {pipeline_mode = #tpu.pipeline_mode<synchronous>, transform_indices = @transform_3, window_bounds = array<i64: 128, 128>}, {pipeline_mode = #tpu.pipeline_mode<synchronous>, transform_indices = @transform_4, window_bounds = array<i64: 1, 128>}, {pipeline_mode = #tpu.pipeline_mode<synchronous>, transform_indices = @transform_5, window_bounds = array<i64: 128, 128>}, {pipeline_mode = #tpu.pipeline_mode<synchronous>, transform_indices = @transform_6, window_bounds = array<i64: 1, 128>}, {transform_indices = @transform_7, window_bounds = array<i64: 16, 128>}]} {
    %c0 = arith.constant 0 : index
    %c0_0 = arith.constant 0 : index
    %0 = vector.load %arg1[%c0, %c0_0] : memref<16x128xbf16, #tpu.memory_space<vmem>>, vector<16x128xbf16>
    %c0_1 = arith.constant 0 : index
    %c0_2 = arith.constant 0 : index
    %1 = vector.load %arg2[%c0_1, %c0_2] : memref<128x128xbf16, #tpu.memory_space<vmem>>, vector<128x128xbf16>
    %cst = arith.constant dense<0.000000e+00> : vector<16x128xf32>
    %2 = tpu.matmul %0, %1, %cst {dimension_numbers = #tpu.dot_dimension_numbers<[1], [0], [0], [1], [0, 0, 1, 1], [], []>} : vector<16x128xbf16>, vector<128x128xbf16>, vector<16x128xf32> -> vector<16x128xf32>
    %c0_3 = arith.constant 0 : index
    %c0_4 = arith.constant 0 : index
    %3 = vector.load %arg3[%c0_3, %c0_4] : memref<1x128xf32, #tpu.memory_space<vmem>>, vector<1x128xf32>
    %4 = vector.broadcast %3 : vector<1x128xf32> to vector<16x128xf32>
    %5 = arith.addf %2, %4 : vector<16x128xf32>
    %cst_5 = arith.constant 0.000000e+00 : f32
    %6 = vector.broadcast %cst_5 : f32 to vector<16x128xf32>
    %7 = arith.maximumf %5, %6 : vector<16x128xf32>
    %8 = arith.truncf %7 : vector<16x128xf32> to vector<16x128xbf16>
    %c0_6 = arith.constant 0 : index
    %c0_7 = arith.constant 0 : index
    %9 = vector.load %arg9[%c0_6, %c0_7] : memref<16x128xbf16, #tpu.memory_space<vmem>>, vector<16x128xbf16>
    tpu.vector_store %arg9[%c0_6, %c0_7], %8 {strides = array<i32>} : memref<16x128xbf16, #tpu.memory_space<vmem>>, vector<16x128xbf16>,
    %c0_8 = arith.constant 0 : index
    %c0_9 = arith.constant 0 : index
    %10 = vector.load %arg9[%c0_8, %c0_9] : memref<16x128xbf16, #tpu.memory_space<vmem>>, vector<16x128xbf16>
    %c0_10 = arith.constant 0 : index
    %c0_11 = arith.constant 0 : index
    %11 = vector.load %arg4[%c0_10, %c0_11] : memref<128x128xbf16, #tpu.memory_space<vmem>>, vector<128x128xbf16>
    %cst_12 = arith.constant dense<0.000000e+00> : vector<16x128xf32>
    %12 = tpu.matmul %10, %11, %cst_12 {dimension_numbers = #tpu.dot_dimension_numbers<[1], [0], [0], [1], [0, 0, 1, 1], [], []>} : vector<16x128xbf16>, vector<128x128xbf16>, vector<16x128xf32> -> vector<16x128xf32>
    %c0_13 = arith.constant 0 : index
    %c0_14 = arith.constant 0 : index
    %13 = vector.load %arg5[%c0_13, %c0_14] : memref<1x128xf32, #tpu.memory_space<vmem>>, vector<1x128xf32>
    %14 = vector.broadcast %13 : vector<1x128xf32> to vector<16x128xf32>
    %15 = arith.addf %12, %14 : vector<16x128xf32>
    %cst_15 = arith.constant 0.000000e+00 : f32
    %16 = vector.broadcast %cst_15 : f32 to vector<16x128xf32>
    %17 = arith.maximumf %15, %16 : vector<16x128xf32>
    %18 = arith.truncf %17 : vector<16x128xf32> to vector<16x128xbf16>
    %c0_16 = arith.constant 0 : index
    %c0_17 = arith.constant 0 : index
    %19 = vector.load %arg10[%c0_16, %c0_17] : memref<16x128xbf16, #tpu.memory_space<vmem>>, vector<16x128xbf16>
    tpu.vector_store %arg10[%c0_16, %c0_17], %18 {strides = array<i32>} : memref<16x128xbf16, #tpu.memory_space<vmem>>, vector<16x128xbf16>,
    %c0_18 = arith.constant 0 : index
    %c0_19 = arith.constant 0 : index
    %20 = vector.load %arg10[%c0_18, %c0_19] : memref<16x128xbf16, #tpu.memory_space<vmem>>, vector<16x128xbf16>
    %c0_20 = arith.constant 0 : index
    %c0_21 = arith.constant 0 : index
    %21 = vector.load %arg6[%c0_20, %c0_21] : memref<128x128xbf16, #tpu.memory_space<vmem>>, vector<128x128xbf16>
    %cst_22 = arith.constant dense<0.000000e+00> : vector<16x128xf32>
    %22 = tpu.matmul %20, %21, %cst_22 {dimension_numbers = #tpu.dot_dimension_numbers<[1], [0], [0], [1], [0, 0, 1, 1], [], []>} : vector<16x128xbf16>, vector<128x128xbf16>, vector<16x128xf32> -> vector<16x128xf32>
    %c0_23 = arith.constant 0 : index
    %c0_24 = arith.constant 0 : index
    %23 = vector.load %arg7[%c0_23, %c0_24] : memref<1x128xf32, #tpu.memory_space<vmem>>, vector<1x128xf32>
    %24 = vector.broadcast %23 : vector<1x128xf32> to vector<16x128xf32>
    %25 = arith.addf %22, %24 : vector<16x128xf32>
    %c0_25 = arith.constant 0 : index
    %c0_26 = arith.constant 0 : index
    %26 = vector.load %arg8[%c0_25, %c0_26] : memref<16x128xf32, #tpu.memory_space<vmem>>, vector<16x128xf32>
    tpu.vector_store %arg8[%c0_25, %c0_26], %25 {strides = array<i32>} : memref<16x128xf32, #tpu.memory_space<vmem>>, vector<16x128xf32>,
    return
  }
  func.func @transform_0(%arg0: i32) -> (i32, i32) {
    %c0_i32 = arith.constant 0 : i32
    %c0_i32_0 = arith.constant 0 : i32
    return %arg0, %c0_i32 : i32, i32
  }
  func.func @transform_1(%arg0: i32) -> (i32, i32) {
    %c0_i32 = arith.constant 0 : i32
    %c0_i32_0 = arith.constant 0 : i32
    %c0_i32_1 = arith.constant 0 : i32
    return %c0_i32, %c0_i32_0 : i32, i32
  }
  func.func @transform_2(%arg0: i32) -> (i32, i32) {
    %c0_i32 = arith.constant 0 : i32
    %c0_i32_0 = arith.constant 0 : i32
    %c0_i32_1 = arith.constant 0 : i32
    return %c0_i32, %c0_i32_0 : i32, i32
  }
  func.func @transform_3(%arg0: i32) -> (i32, i32) {
    %c0_i32 = arith.constant 0 : i32
    %c0_i32_0 = arith.constant 0 : i32
    %c0_i32_1 = arith.constant 0 : i32
    return %c0_i32, %c0_i32_0 : i32, i32
  }
  func.func @transform_4(%arg0: i32) -> (i32, i32) {
    %c0_i32 = arith.constant 0 : i32
    %c0_i32_0 = arith.constant 0 : i32
    %c0_i32_1 = arith.constant 0 : i32
    return %c0_i32, %c0_i32_0 : i32, i32
  }
  func.func @transform_5(%arg0: i32) -> (i32, i32) {
    %c0_i32 = arith.constant 0 : i32
    %c0_i32_0 = arith.constant 0 : i32
    %c0_i32_1 = arith.constant 0 : i32
    return %c0_i32, %c0_i32_0 : i32, i32
  }
  func.func @transform_6(%arg0: i32) -> (i32, i32) {
    %c0_i32 = arith.constant 0 : i32
    %c0_i32_0 = arith.constant 0 : i32
    %c0_i32_1 = arith.constant 0 : i32
    return %c0_i32, %c0_i32_0 : i32, i32
  }
  func.func @transform_7(%arg0: i32) -> (i32, i32) {
    %c0_i32 = arith.constant 0 : i32
    %c0_i32_0 = arith.constant 0 : i32
    return %arg0, %c0_i32 : i32, i32
  }
}

</mosaic_0001>

<bundles_post_ra>
// kernel: mlp_forward_fused.1
= control target key start
LH: loop header
LB: loop body
LE: loop exit
PB: predicated region body
PF: predicated region fallthrough
CT: control target
= control target key end

     0   :  { %12 = vsyncpa [#allocation5], 0  ;;  %s664_s0 = inlined_call_operand.vmem [shape: bf16[16,128], index: 0, kind: input, shape index: {}]   ;;  %s665_s1 = inlined_call_operand.hbm [shape: bf16[128,128], index: 1, kind: input, shape index: {}]   ;;  %s666_s2 = inlined_call_operand.vmem [shape: f32[1,128], index: 2, kind: input, shape index: {}]   ;;  %s667_s3 = inlined_call_operand.hbm [shape: bf16[128,128], index: 3, kind: input, shape index: {}]   ;;  %s668_s4 = inlined_call_operand.vmem [shape: f32[1,128], index: 4, kind: input, shape index: {}]   ;;  %s669_s5 = inlined_call_operand.hbm [shape: bf16[128,128], index: 5, kind: input, shape index: {}]   ;;  %s670_s6 = inlined_call_operand.vmem [shape: f32[1,128], index: 6, kind: input, shape index: {}]   ;;  %s671_s7 = inlined_call_operand.vmem [shape: f32[16,128], index: 7, kind: output, shape index: {}]  }
   0x1   :  { %13 = vsyncpa [#allocation7], 0  ;;  %s35_s26 = sshll.u32 %s667_s3, 4  ;;  %s592_s27 = smov [#allocation6]   ;;  %s36_s26 = int_to_ptr.hbm [resolvable:$true] %s35_s26 }
   0x2   :  { %s37_s28 = sshll.u32 %s592_s27, 4  ;;  %s20_s8 = sshll.u32 %s665_s1, 4  ;;  %s38_s28 = int_to_ptr.vmem [resolvable:$true] %s37_s28  ;;  %s21_s8 = int_to_ptr.hbm [resolvable:$true] %s20_s8 }
   0x3   :  { %s593_s9 = smov 64   ;;  %s594_s10 = smov 4  }
   0x4   :  { %43 = dma.hbm_to_vmem [thread:$0]  %s36_s26, 1024, %s38_s28, [#allocation7], %s593_s9, %s593_s9, %s594_s10  }
   0x5   :  { %s595_s11 = smov [#allocation4]   ;;  %s50_s15 = sshll.u32 %s669_s5, 4  ;;  %s51_s15 = int_to_ptr.hbm [resolvable:$true] %s50_s15 }
   0x6   :  { %s22_s12 = sshll.u32 %s595_s11, 4  ;;  %s596_s3 = smov [#allocation8]   ;;  %s23_s12 = int_to_ptr.vmem [resolvable:$true] %s22_s12 }
   0x7   :  { %28 = dma.hbm_to_vmem [thread:$0]  %s21_s8, 1024, %s23_s12, [#allocation5], %s593_s9, %s593_s9, %s594_s10  }
   0x8   :  { %s52_s16 = sshll.u32 %s596_s3, 4  ;;  %s53_s16 = int_to_ptr.vmem [resolvable:$true] %s52_s16 }
   0x9   :  { %58 = dma.hbm_to_vmem [thread:$0]  %s51_s15, 1024, %s53_s16, [#allocation7], %s593_s9, %s593_s9, %s594_s10  }
   0xa   :  { %588 = dma.done.wait [#allocation5], 1024  }
   0xb   :  { %589 = vsyncadd [#allocation5], 4294966272 }
   0xc   :  { %590 = dma.done.wait [#allocation7], 2048  }
   0xd   :  { %591 = vsyncadd [#allocation7], 4294965248  ;;  %v479_v0 = vld [vmem:[#allocation4 + $0x38] sm:$0xff]  ;;  %v478_v1 = vld [vmem:[#allocation4 + $0x30] sm:$0xff] }
   0xe   :  { %149 = vmatpush.bf16.msra.mxu0 %v479_v0  ;;  %v488_v2 = vld [vmem:[#allocation6 + $0x38] sm:$0xff]  ;;  %v487_v3 = vld [vmem:[#allocation6 + $0x30] sm:$0xff]  ;;  %v477_v4 = vld [vmem:[#allocation4 + $0x28] sm:$0xff] }
   0xf   :  { %245 = vmatpush.bf16.msra.mxu1 %v488_v2  ;;  %v476_v5 = vld [vmem:[#allocation4 + $0x20] sm:$0xff]  ;;  %v475_v6 = vld [vmem:[#allocation4 + $0x18] sm:$0xff]  ;;  %v474_v7 = vld [vmem:[#allocation4 + $0x10] sm:$0xff] }
  0x10   :  { %v473_v8 = vld [vmem:[#allocation4 + $0x8] sm:$0xff]  ;;  %v472_v9 = vld [vmem:[#allocation4] sm:$0xff]  ;;  %v471_v10 = vld [vmem:[%s664_s0] sm:$0xff] }
  0x11   :  { %v486_v11 = vld [vmem:[#allocation6 + $0x28] sm:$0xff]  ;;  %v485_v12 = vld [vmem:[#allocation6 + $0x20] sm:$0xff]  ;;  %v484_v13 = vld [vmem:[#allocation6 + $0x18] sm:$0xff] }
  0x12   :  { %150 = vmatpush.bf16.msra.mxu0 %v478_v1  ;;  %v483_v14 = vld [vmem:[#allocation6 + $0x10] sm:$0xff]  ;;  %v482_v15 = vld [vmem:[#allocation6 + $0x8] sm:$0xff]  ;;  %v481_v16 = vld [vmem:[#allocation6] sm:$0xff] }
  0x13   :  { %246 = vmatpush.bf16.msra.mxu1 %v487_v3  ;;  %v497_v17 = vld [vmem:[#allocation8 + $0x38] sm:$0xff]  ;;  %v496_v18 = vld [vmem:[#allocation8 + $0x30] sm:$0xff]  ;;  %v495_v28 = vld [vmem:[#allocation8 + $0x28] sm:$0xff] }
  0x14   :  { %341 = vmatpush.bf16.msra.mxu2 %v497_v17  ;;  %v513_v20 = vld [vmem:[%s666_s2] ss:$0 sm:$0xff]  ;;  %v494_v29 = vld [vmem:[#allocation8 + $0x20] sm:$0xff]  ;;  %v493_v30 = vld [vmem:[#allocation8 + $0x18] sm:$0xff] }
  0x15   :  { %v492_v31 = vld [vmem:[#allocation8 + $0x10] sm:$0xff]  ;;  %v491_v32 = vld [vmem:[#allocation8 + $0x8] sm:$0xff]  ;;  %v490_v33 = vld [vmem:[#allocation8] sm:$0xff] }
  0x16   :  { %151 = vmatpush.bf16.msra.mxu0 %v477_v4  ;;  %v514_v35 = vld [vmem:[%s668_s4] ss:$0 sm:$0xff] }
  0x17   :  { %247 = vmatpush.bf16.msra.mxu1 %v486_v11  ;;  %v515_v43 = vld [vmem:[%s670_s6] ss:$0 sm:$0xff] }
  0x18   :  { %342 = vmatpush.bf16.msra.mxu2 %v496_v18 }
  0x1a   :  { %152 = vmatpush.bf16.msra.mxu0 %v476_v5 }
  0x1b   :  { %248 = vmatpush.bf16.msra.mxu1 %v485_v12 }
  0x1c   :  { %343 = vmatpush.bf16.msra.mxu2 %v495_v28 }
  0x1e   :  { %153 = vmatpush.bf16.msra.mxu0 %v475_v6 }
  0x1f   :  { %249 = vmatpush.bf16.msra.mxu1 %v484_v13 }
  0x20   :  { %344 = vmatpush.bf16.msra.mxu2 %v494_v29 }
  0x22   :  { %154 = vmatpush.bf16.msra.mxu0 %v474_v7 }
  0x23   :  { %250 = vmatpush.bf16.msra.mxu1 %v483_v14 }
  0x24   :  { %345 = vmatpush.bf16.msra.mxu2 %v493_v30 }
  0x26   :  { %155 = vmatpush.bf16.msra.mxu0 %v473_v8 }
  0x27   :  { %251 = vmatpush.bf16.msra.mxu1 %v482_v15 }
  0x28   :  { %346 = vmatpush.bf16.msra.mxu2 %v492_v31 }
  0x2a   :  { %156 = vmatpush.bf16.msra.mxu0 %v472_v9 }
  0x2b   :  { %252 = vmatpush.bf16.msra.mxu1 %v481_v16 }
  0x2c   :  { %347 = vmatpush.bf16.msra.mxu2 %v491_v32 }
  0x2d   :  { %157 = vmatmul.bf16.vlgmr.msra.gmra.mxu0 %v471_v10 }
  0x30   :  { %348 = vmatpush.bf16.msra.mxu2 %v490_v33 }
  0xaa   :  { %v158_v19 = vpop.f32.mrf.mxu0 }
  0xab   :  { %v159_v21 = vadd.f32 %v513_v20, %v158_v19 }
  0xad   :  { %v163_v24 = vmax.f32 %v159_v21, 0.0 }
  0xb2   :  { %v160_v22 = vpop.f32.mrf.mxu0 }
  0xb3   :  { %v161_v23 = vadd.f32 %v513_v20, %v160_v22 }
  0xb5   :  { %v164_v25 = vmax.f32 %v161_v23, 0.0 }
  0xb7   :  { %v501_v26 = vpack.c.bf16 %v164_v25, %v163_v24 }
  0xb9   :  { %502 = vst [vmem:[#allocation2] sm:$0xff] %v501_v26  }
  0xc0   :  { %v480_v27 = vld [vmem:[#allocation2] sm:$0xff] }
  0xc1   :  { %253 = vmatmul.bf16.vlgmr.msra.gmra.mxu1 %v480_v27 }
 0x13e   :  { %v254_v34 = vpop.f32.mrf.mxu1 }
 0x13f   :  { %v255_v36 = vadd.f32 %v514_v35, %v254_v34 }
 0x141   :  { %v259_v39 = vmax.f32 %v255_v36, 0.0 }
 0x146   :  { %v256_v37 = vpop.f32.mrf.mxu1 }
 0x147   :  { %v257_v38 = vadd.f32 %v514_v35, %v256_v37 }
 0x149   :  { %v260_v40 = vmax.f32 %v257_v38, 0.0 }
 0x14b   :  { %v506_v41 = vpack.c.bf16 %v260_v40, %v259_v39 }
 0x14d   :  { %507 = vst [vmem:[#allocation3] sm:$0xff] %v506_v41  }
 0x154   :  { %v489_v42 = vld [vmem:[#allocation3] sm:$0xff] }
 0x155   :  { %349 = vmatmul.bf16.vlgmr.msra.gmra.mxu2 %v489_v42 }
 0x1d8   :  { %v350_v44 = vpop.f32.mrf.mxu2 }
 0x1d9   :  { %v351_v45 = vadd.f32 %v515_v43, %v350_v44 }
 0x1db   :  { %355 = vst [vmem:[%s671_s7] sm:$0xff] %v351_v45 }
 0x1e0   :  { %v352_v46 = vpop.f32.mrf.mxu2 }
 0x1e1   :  { %v353_v47 = vadd.f32 %v515_v43, %v352_v46 }
 0x1e3   :  { %356 = vst [vmem:[%s671_s7 + $0x8] sm:$0xff] %v353_v47 }
 0x1e4   :  { %361 = vsyncpa [#allocation5], 1 }
 0x1e5   :  { %362 = vsyncpa [#allocation7], 1 }

</bundles_post_ra>
